<compile_context>
chip_gen: v6e
topology: v6e:2x2x1
jax: 0.10.0
libtpu: 0.0.40
codegen_flags: <defaults>
</compile_context>

<pallas_src>
import functools

import jax
import jax.numpy as jnp
from jax import lax
from jax.experimental import pallas as pl
from jax.experimental.pallas import tpu as pltpu

ASP_EPS = 1e-12   # self.eps in the PyTorch module
BN_EPS = 1e-5     # nn.BatchNorm1d default eps


def _asp_kernel(x_ref, wx_ref, wms_ref, b1_ref, bns_ref, bnsh_ref, w2_ref,
                out_ref,
                sum_x, sum_x2, hconst, m_run, s_run, sx_run, sx2_run,
                *, true_len, time_chunk, num_chunks, valid_tail, has_tail):
    """One grid step == one batch element.  x_ref holds the whole (1, L_pad, C)
    bf16 slab in VMEM, so x is read from HBM exactly once per batch."""

    def chunk(t):
        # (time_chunk, C) view of the resident slab; offsets are multiples of
        # time_chunk (itself a multiple of 8) -> aligned sublane slices.
        if isinstance(t, int):
            off = t * time_chunk
        else:
            off = pl.multiple_of(t * time_chunk, time_chunk)
        return x_ref[0, pl.ds(off, time_chunk), :]

    # ---- pass 1: global sum(x), sum(x^2) over time (zero padding is harmless)
    sum_x[...] = jnp.zeros_like(sum_x)
    sum_x2[...] = jnp.zeros_like(sum_x2)

    def stats_chunk(t):
        xf = chunk(t).astype(jnp.float32)                       # (TL, C)
        sum_x[...] += jnp.sum(xf, axis=0, keepdims=True)
        sum_x2[...] += jnp.sum(xf * xf, axis=0, keepdims=True)

    if num_chunks == 1:
        stats_chunk(0)
    else:
        pl.loop(0, num_chunks)(stats_chunk)

    # ---- global context -> constant part of the TDNN pre-activation ---------
    inv_l = 1.0 / float(true_len)
    mean_g = sum_x[...] * inv_l                                  # (1, C)
    var_g = sum_x2[...] * inv_l - mean_g * mean_g
    std_g = jnp.sqrt(jnp.maximum(var_g, ASP_EPS))
    ctx = jnp.concatenate([mean_g, std_g], axis=-1).astype(jnp.bfloat16)  # (1, 2C)
    hconst[...] = (jnp.dot(ctx, wms_ref[...], preferred_element_type=jnp.float32)
                   + b1_ref[...])                                # (1, A)

    # ---- pass 2: attention TDNN + online-softmax moment accumulation --------
    m_run[...] = jnp.full_like(m_run, -jnp.inf)
    s_run[...] = jnp.zeros_like(s_run)
    sx_run[...] = jnp.zeros_like(sx_run)
    sx2_run[...] = jnp.zeros_like(sx2_run)

    def attn_chunk(t, mask_tail):
        xc = chunk(t)                                            # (TL, C) bf16
        # TDNN block: 1x1 conv (bf16 MXU, f32 acc) + ReLU + folded BN + tanh.
        h = (jnp.dot(xc, wx_ref[...], preferred_element_type=jnp.float32)
             + hconst[...])                                      # (TL, A)
        h = jnp.maximum(h, 0.0)
        h = h * bns_ref[...] + bnsh_ref[...]
        h = jnp.tanh(h)
        # 1x1 conv (A -> C): attention logits.  b2 is dropped -- softmax over
        # time is invariant to a per-channel constant added to every frame.
        a = jnp.dot(h.astype(jnp.bfloat16), w2_ref[...],
                    preferred_element_type=jnp.float32)          # (TL, C)

        # Online softmax.  NOTE: padded rows of the last chunk do contribute to
        # m_new (any max shift is a valid softmax shift) but MUST be zeroed out
        # of p BEFORE the sums below -- keep the mask ahead of the reductions.
        m_new = jnp.maximum(m_run[...], jnp.max(a, axis=0, keepdims=True))
        alpha = jnp.exp(m_run[...] - m_new)                      # (1, C)
        p = jnp.exp(a - m_new)                                   # (TL, C)
        if mask_tail:
            row = lax.broadcasted_iota(jnp.int32, (time_chunk, 1), 0)
            p = jnp.where(row < valid_tail, p, 0.0)
        px = p * xc                                              # bf16 -> f32 promo
        s_run[...] = alpha * s_run[...] + jnp.sum(p, axis=0, keepdims=True)
        sx_run[...] = alpha * sx_run[...] + jnp.sum(px, axis=0, keepdims=True)
        sx2_run[...] = alpha * sx2_run[...] + jnp.sum(px * xc, axis=0,
                                                      keepdims=True)
        m_run[...] = m_new

    if num_chunks == 1:
        attn_chunk(0, mask_tail=has_tail)
    else:
        if has_tail:
            pl.loop(0, num_chunks - 1)(
                functools.partial(attn_chunk, mask_tail=False))
            attn_chunk(num_chunks - 1, mask_tail=True)   # only the tail pays the mask
        else:
            pl.loop(0, num_chunks)(functools.partial(attn_chunk, mask_tail=False))

    # ---- finalize: exact reciprocal, dense (1, 2C) lane write ----------------
    inv_s = 1.0 / s_run[...]                                     # exact, per batch
    mean = sx_run[...] * inv_s
    var = sx2_run[...] * inv_s - mean * mean
    std = jnp.sqrt(jnp.maximum(var, ASP_EPS))
    out_ref[0] = jnp.concatenate([mean, std], axis=-1)           # (1, 2C)


def attentive_statistics_pooling(x, params, *, time_chunk=512):
    """x: (B, C, L) float32 -> (B, 2*C) float32 (concat attentive mean, std)."""
    B, C, L = x.shape
    A = params["w1"].shape[0]

    # Weights pre-transposed for the channels-on-lanes (TL, C) @ (C, A) layout.
    w1 = jnp.asarray(params["w1"], jnp.float32)                       # (A, 3C)
    wx_t = jnp.transpose(w1[:, :C]).astype(jnp.bfloat16)              # (C, A)
    wms_t = jnp.transpose(w1[:, C:]).astype(jnp.bfloat16)             # (2C, A)
    b1 = jnp.asarray(params["b1"], jnp.float32).reshape(1, A)
    scale = params["bn_gamma"] / jnp.sqrt(params["bn_var"] + BN_EPS)  # fold BN (eval)
    shift = params["bn_beta"] - params["bn_mean"] * scale
    bn_scale = scale.astype(jnp.float32).reshape(1, A)
    bn_shift = shift.astype(jnp.float32).reshape(1, A)
    w2_t = jnp.transpose(
        jnp.asarray(params["w2"], jnp.float32)).astype(jnp.bfloat16)  # (A, C)
    # b2 intentionally not passed (softmax-invariant).

    # In-VMEM time chunking (chunk length is a multiple of 8 sublanes).
    if L <= time_chunk:
        tl = -(-L // 8) * 8
        num_chunks = 1
    else:
        tl = -(-time_chunk // 8) * 8
        num_chunks = -(-L // tl)
    l_pad = num_chunks * tl
    has_tail = l_pad != L
    valid_tail = L - (num_chunks - 1) * tl

    # Channels-on-lanes layout: (B, L_pad, C) bf16; padded frames are zeros
    # (harmless for sum/sum^2; masked out of the softmax sums inside the kernel).
    x_bf = jnp.transpose(x.astype(jnp.bfloat16), (0, 2, 1))
    if has_tail:
        x_bf = jnp.pad(x_bf, ((0, 0), (0, l_pad - L), (0, 0)))

    # Explicit VMEM budget: double-buffered x slab + f32 chunk temporaries +
    # double-buffered weights + accumulators (capped at 64 MiB for v7x).
    x_slab = l_pad * C * 2
    chunk_f32 = tl * max(C, A) * 4
    weights = 2 * (3 * C * A * 2 + 3 * A * 4)
    vmem_need = 2 * x_slab + 8 * chunk_f32 + weights + 16 * max(C, A) * 4 + (1 << 20)
    vmem_limit = int(min(64 * (1 << 20), max(vmem_need, 8 * (1 << 20))))

    kernel = functools.partial(
        _asp_kernel, true_len=L, time_chunk=tl, num_chunks=num_chunks,
        valid_tail=valid_tail, has_tail=has_tail)

    cost = pl.CostEstimate(
        flops=int(4 * A * C * L * B),                 # two MXU dots per frame
        transcendentals=int(B * L * (A + C)),         # tanh (A) + exp (C) per frame
        bytes_accessed=int(B * C * l_pad * 2          # x read once, bf16
                           + 3 * A * C * 2            # bf16 weights
                           + B * 2 * C * 4),          # f32 output
    )

    out = pl.pallas_call(
        kernel,
        out_shape=jax.ShapeDtypeStruct((B, 1, 2 * C), jnp.float32),
        grid_spec=pltpu.PrefetchScalarGridSpec(
            num_scalar_prefetch=0,
            grid=(B,),
            in_specs=[
                pl.BlockSpec((1, l_pad, C), lambda b: (b, 0, 0)),    # x (bf16)
                pl.BlockSpec((C, A), lambda b: (0, 0)),              # wx^T
                pl.BlockSpec((2 * C, A), lambda b: (0, 0)),          # wms^T
                pl.BlockSpec((1, A), lambda b: (0, 0)),              # b1
                pl.BlockSpec((1, A), lambda b: (0, 0)),              # BN scale
                pl.BlockSpec((1, A), lambda b: (0, 0)),              # BN shift
                pl.BlockSpec((A, C), lambda b: (0, 0)),              # w2^T
            ],
            out_specs=pl.BlockSpec((1, 1, 2 * C), lambda b: (b, 0, 0)),
            scratch_shapes=[
                pltpu.VMEM((1, C), jnp.float32),   # sum_x
                pltpu.VMEM((1, C), jnp.float32),   # sum_x2
                pltpu.VMEM((1, A), jnp.float32),   # hconst = [mg;sg]@wms^T + b1
                pltpu.VMEM((1, C), jnp.float32),   # m_run  (online-softmax max)
                pltpu.VMEM((1, C), jnp.float32),   # s_run  (sum p)
                pltpu.VMEM((1, C), jnp.float32),   # sx_run (sum p*x)
                pltpu.VMEM((1, C), jnp.float32),   # sx2_run (sum p*x^2)
            ],
        ),
        compiler_params=pltpu.CompilerParams(
            dimension_semantics=("parallel",),
            vmem_limit_bytes=vmem_limit),
        cost_estimate=cost,
    )(x_bf, wx_t, wms_t, b1, bn_scale, bn_shift, w2_t)
    return out.reshape(B, 2 * C)


def _reference(x, params):
    """Pure-JAX f32 reference of the forward pass (lengths=None, BN inference)."""
    mean_g = x.mean(-1, keepdims=True)
    std_g = jnp.sqrt(jnp.maximum(((x - mean_g) ** 2).mean(-1, keepdims=True), ASP_EPS))
    attn = jnp.concatenate(
        [x, jnp.broadcast_to(mean_g, x.shape), jnp.broadcast_to(std_g, x.shape)], axis=1)
    h = jnp.einsum("oi,bil->bol", params["w1"], attn) + params["b1"][None, :, None]
    h = jnp.maximum(h, 0.0)
    scale = params["bn_gamma"] / jnp.sqrt(params["bn_var"] + BN_EPS)
    shift = params["bn_beta"] - params["bn_mean"] * scale
    h = jnp.tanh(h * scale[None, :, None] + shift[None, :, None])
    a = jnp.einsum("oi,bil->bol", params["w2"], h) + params["b2"][None, :, None]
    a = jax.nn.softmax(a, axis=-1)
    mean = (a * x).sum(-1)
    std = jnp.sqrt(jnp.maximum((a * (x - mean[..., None]) ** 2).sum(-1), ASP_EPS))
    return jnp.concatenate([mean, std], axis=1)


def _make_params(key, C, A):
    k1, k2, k3, k4 = jax.random.split(key, 4)
    r = jnp.arange(A, dtype=jnp.float32) / A
    return dict(
        w1=0.1 * jax.random.normal(k1, (A, 3 * C), dtype=jnp.float32),   # tdnn conv weight
        b1=0.1 * jax.random.normal(k2, (A,), dtype=jnp.float32),         # tdnn conv bias
        bn_gamma=1.0 + 0.1 * r,                                          # BatchNorm weight
        bn_beta=0.01 * r,                                                # BatchNorm bias
        bn_mean=0.05 * r,                                                # running mean
        bn_var=1.0 + 0.1 * r,                                            # running var
        w2=0.1 * jax.random.normal(k3, (C, A), dtype=jnp.float32),       # final conv weight
        b2=0.1 * jax.random.normal(k4, (C,), dtype=jnp.float32),         # final conv bias
    )


def _check(key, B, C, L, A, time_chunk):
    kx, kp = jax.random.split(key)
    x = jax.random.normal(kx, (B, C, L), dtype=jnp.float32)
    params = _make_params(kp, C, A)
    out = jax.block_until_ready(
        attentive_statistics_pooling(x, params, time_chunk=time_chunk))
    ref = _reference(x, params)
    assert out.shape == (B, 2 * C), out.shape
    assert bool(jnp.all(jnp.isfinite(out)))
    # bf16 MXU inputs -> looser tolerance than pure f32.
    assert bool(jnp.allclose(out, ref, atol=2e-2, rtol=2e-2)), (
        float(jnp.max(jnp.abs(out - ref))))


if __name__ == "__main__":
    key = jax.random.PRNGKey(0)
    k1, k2 = jax.random.split(key)
    # 1) single in-VMEM chunk (TL == L)
    _check(k1, B=2, C=8, L=16, A=16, time_chunk=512)
    # 2) multi-chunk online-softmax path with a ragged (masked) last chunk
    _check(k2, B=2, C=8, L=200, A=16, time_chunk=128)
    print("KERNEL_OK")
</pallas_src>

<mosaic_0001>
module attributes {stable_mosaic.version = 11 : i64} {
  func.func @_asp_kernel(%arg0: i32, %arg1: memref<1x16x8xbf16, #tpu.memory_space<vmem>>, %arg2: memref<8x16xbf16, #tpu.memory_space<vmem>>, %arg3: memref<16x16xbf16, #tpu.memory_space<vmem>>, %arg4: memref<1x16xf32, #tpu.memory_space<vmem>>, %arg5: memref<1x16xf32, #tpu.memory_space<vmem>>, %arg6: memref<1x16xf32, #tpu.memory_space<vmem>>, %arg7: memref<16x8xbf16, #tpu.memory_space<vmem>>, %arg8: memref<1x1x16xf32, #tpu.memory_space<vmem>>, %arg9: memref<1x8xf32, #tpu.memory_space<vmem>>, %arg10: memref<1x8xf32, #tpu.memory_space<vmem>>, %arg11: memref<1x16xf32, #tpu.memory_space<vmem>>, %arg12: memref<1x8xf32, #tpu.memory_space<vmem>>, %arg13: memref<1x8xf32, #tpu.memory_space<vmem>>, %arg14: memref<1x8xf32, #tpu.memory_space<vmem>>, %arg15: memref<1x8xf32, #tpu.memory_space<vmem>>) attributes {dimension_semantics = [#tpu.dimension_semantics<parallel>], iteration_bounds = array<i64: 2>, scalar_prefetch = 0 : i64, scratch_operands = 7 : i64, tpu.core_type = #tpu.core_type<tc>, window_params = [{transform_indices = @transform_0, window_bounds = array<i64: 1, 16, 8>}, {pipeline_mode = #tpu.pipeline_mode<synchronous>, transform_indices = @transform_1, window_bounds = array<i64: 8, 16>}, {pipeline_mode = #tpu.pipeline_mode<synchronous>, transform_indices = @transform_2, window_bounds = array<i64: 16, 16>}, {pipeline_mode = #tpu.pipeline_mode<synchronous>, transform_indices = @transform_3, window_bounds = array<i64: 1, 16>}, {pipeline_mode = #tpu.pipeline_mode<synchronous>, transform_indices = @transform_4, window_bounds = array<i64: 1, 16>}, {pipeline_mode = #tpu.pipeline_mode<synchronous>, transform_indices = @transform_5, window_bounds = array<i64: 1, 16>}, {pipeline_mode = #tpu.pipeline_mode<synchronous>, transform_indices = @transform_6, window_bounds = array<i64: 16, 8>}, {transform_indices = @transform_7, window_bounds = array<i64: 1, 1, 16>}]} {
    %cst = arith.constant 0.000000e+00 : f32
    %0 = vector.broadcast %cst : f32 to vector<1x8xf32>
    %c0 = arith.constant 0 : index
    %c0_0 = arith.constant 0 : index
    %1 = vector.load %arg9[%c0, %c0_0] : memref<1x8xf32, #tpu.memory_space<vmem>>, vector<1x8xf32>
    tpu.vector_store %arg9[%c0, %c0_0], %0 {strides = array<i32>} : memref<1x8xf32, #tpu.memory_space<vmem>>, vector<1x8xf32>,
    %cst_1 = arith.constant 0.000000e+00 : f32
    %2 = vector.broadcast %cst_1 : f32 to vector<1x8xf32>
    %c0_2 = arith.constant 0 : index
    %c0_3 = arith.constant 0 : index
    %3 = vector.load %arg10[%c0_2, %c0_3] : memref<1x8xf32, #tpu.memory_space<vmem>>, vector<1x8xf32>
    tpu.vector_store %arg10[%c0_2, %c0_3], %2 {strides = array<i32>} : memref<1x8xf32, #tpu.memory_space<vmem>>, vector<1x8xf32>,
    %c0_4 = arith.constant 0 : index
    %c0_5 = arith.constant 0 : index
    %c0_6 = arith.constant 0 : index
    %4 = vector.load %arg1[%c0_4, %c0_5, %c0_6] : memref<1x16x8xbf16, #tpu.memory_space<vmem>>, vector<1x16x8xbf16>
    %5 = vector.shape_cast %4 : vector<1x16x8xbf16> to vector<16x8xbf16>
    %6 = arith.extf %5 : vector<16x8xbf16> to vector<16x8xf32>
    %c0_7 = arith.constant 0 : index
    %c0_8 = arith.constant 0 : index
    %7 = vector.load %arg9[%c0_7, %c0_8] : memref<1x8xf32, #tpu.memory_space<vmem>>, vector<1x8xf32>
    %cst_9 = arith.constant dense<0.000000e+00> : vector<8xf32>
    %8 = vector.multi_reduction <add>, %6, %cst_9 [0] : vector<16x8xf32> to vector<8xf32>
    %9 = vector.shape_cast %8 : vector<8xf32> to vector<1x8xf32>
    %10 = arith.addf %7, %9 : vector<1x8xf32>
    %c0_10 = arith.constant 0 : index
    %c0_11 = arith.constant 0 : index
    %11 = vector.load %arg9[%c0_10, %c0_11] : memref<1x8xf32, #tpu.memory_space<vmem>>, vector<1x8xf32>
    tpu.vector_store %arg9[%c0_10, %c0_11], %10 {strides = array<i32>} : memref<1x8xf32, #tpu.memory_space<vmem>>, vector<1x8xf32>,
    %c0_12 = arith.constant 0 : index
    %c0_13 = arith.constant 0 : index
    %12 = vector.load %arg10[%c0_12, %c0_13] : memref<1x8xf32, #tpu.memory_space<vmem>>, vector<1x8xf32>
    %13 = arith.mulf %6, %6 : vector<16x8xf32>
    %cst_14 = arith.constant dense<0.000000e+00> : vector<8xf32>
    %14 = vector.multi_reduction <add>, %13, %cst_14 [0] : vector<16x8xf32> to vector<8xf32>
    %15 = vector.shape_cast %14 : vector<8xf32> to vector<1x8xf32>
    %16 = arith.addf %12, %15 : vector<1x8xf32>
    %c0_15 = arith.constant 0 : index
    %c0_16 = arith.constant 0 : index
    %17 = vector.load %arg10[%c0_15, %c0_16] : memref<1x8xf32, #tpu.memory_space<vmem>>, vector<1x8xf32>
    tpu.vector_store %arg10[%c0_15, %c0_16], %16 {strides = array<i32>} : memref<1x8xf32, #tpu.memory_space<vmem>>, vector<1x8xf32>,
    %c0_17 = arith.constant 0 : index
    %c0_18 = arith.constant 0 : index
    %18 = vector.load %arg9[%c0_17, %c0_18] : memref<1x8xf32, #tpu.memory_space<vmem>>, vector<1x8xf32>
    %cst_19 = arith.constant 6.250000e-02 : f32
    %19 = vector.broadcast %cst_19 : f32 to vector<1x8xf32>
    %20 = arith.mulf %18, %19 : vector<1x8xf32>
    %c0_20 = arith.constant 0 : index
    %c0_21 = arith.constant 0 : index
    %21 = vector.load %arg10[%c0_20, %c0_21] : memref<1x8xf32, #tpu.memory_space<vmem>>, vector<1x8xf32>
    %cst_22 = arith.constant 6.250000e-02 : f32
    %22 = vector.broadcast %cst_22 : f32 to vector<1x8xf32>
    %23 = arith.mulf %21, %22 : vector<1x8xf32>
    %24 = arith.mulf %20, %20 : vector<1x8xf32>
    %25 = arith.subf %23, %24 : vector<1x8xf32>
    %cst_23 = arith.constant 9.99999996E-13 : f32
    %26 = vector.broadcast %cst_23 : f32 to vector<1x8xf32>
    %27 = arith.maximumf %25, %26 : vector<1x8xf32>
    %28 = math.sqrt %27 : vector<1x8xf32>
    %29 = tpu.concatenate %20, %28 in 1 : vector<1x8xf32>, vector<1x8xf32> -> vector<1x16xf32>
    %30 = arith.truncf %29 : vector<1x16xf32> to vector<1x16xbf16>
    %c0_24 = arith.constant 0 : index
    %c0_25 = arith.constant 0 : index
    %31 = vector.load %arg3[%c0_24, %c0_25] : memref<16x16xbf16, #tpu.memory_space<vmem>>, vector<16x16xbf16>
    %cst_26 = arith.constant dense<0.000000e+00> : vector<1x16xf32>
    %32 = tpu.matmul %30, %31, %cst_26 {dimension_numbers = #tpu.dot_dimension_numbers<[1], [0], [0], [1], [0, 0, 1, 1], [], []>} : vector<1x16xbf16>, vector<16x16xbf16>, vector<1x16xf32> -> vector<1x16xf32>
    %c0_27 = arith.constant 0 : index
    %c0_28 = arith.constant 0 : index
    %33 = vector.load %arg4[%c0_27, %c0_28] : memref<1x16xf32, #tpu.memory_space<vmem>>, vector<1x16xf32>
    %34 = arith.addf %32, %33 : vector<1x16xf32>
    %c0_29 = arith.constant 0 : index
    %c0_30 = arith.constant 0 : index
    %35 = vector.load %arg11[%c0_29, %c0_30] : memref<1x16xf32, #tpu.memory_space<vmem>>, vector<1x16xf32>
    tpu.vector_store %arg11[%c0_29, %c0_30], %34 {strides = array<i32>} : memref<1x16xf32, #tpu.memory_space<vmem>>, vector<1x16xf32>,
    %cst_31 = arith.constant 0xFF800000 : f32
    %36 = vector.broadcast %cst_31 : f32 to vector<1x8xf32>
    %c0_32 = arith.constant 0 : index
    %c0_33 = arith.constant 0 : index
    %37 = vector.load %arg12[%c0_32, %c0_33] : memref<1x8xf32, #tpu.memory_space<vmem>>, vector<1x8xf32>
    tpu.vector_store %arg12[%c0_32, %c0_33], %36 {strides = array<i32>} : memref<1x8xf32, #tpu.memory_space<vmem>>, vector<1x8xf32>,
    %cst_34 = arith.constant 0.000000e+00 : f32
    %38 = vector.broadcast %cst_34 : f32 to vector<1x8xf32>
    %c0_35 = arith.constant 0 : index
    %c0_36 = arith.constant 0 : index
    %39 = vector.load %arg13[%c0_35, %c0_36] : memref<1x8xf32, #tpu.memory_space<vmem>>, vector<1x8xf32>
    tpu.vector_store %arg13[%c0_35, %c0_36], %38 {strides = array<i32>} : memref<1x8xf32, #tpu.memory_space<vmem>>, vector<1x8xf32>,
    %cst_37 = arith.constant 0.000000e+00 : f32
    %40 = vector.broadcast %cst_37 : f32 to vector<1x8xf32>
    %c0_38 = arith.constant 0 : index
    %c0_39 = arith.constant 0 : index
    %41 = vector.load %arg14[%c0_38, %c0_39] : memref<1x8xf32, #tpu.memory_space<vmem>>, vector<1x8xf32>
    tpu.vector_store %arg14[%c0_38, %c0_39], %40 {strides = array<i32>} : memref<1x8xf32, #tpu.memory_space<vmem>>, vector<1x8xf32>,
    %cst_40 = arith.constant 0.000000e+00 : f32
    %42 = vector.broadcast %cst_40 : f32 to vector<1x8xf32>
    %c0_41 = arith.constant 0 : index
    %c0_42 = arith.constant 0 : index
    %43 = vector.load %arg15[%c0_41, %c0_42] : memref<1x8xf32, #tpu.memory_space<vmem>>, vector<1x8xf32>
    tpu.vector_store %arg15[%c0_41, %c0_42], %42 {strides = array<i32>} : memref<1x8xf32, #tpu.memory_space<vmem>>, vector<1x8xf32>,
    %c0_43 = arith.constant 0 : index
    %c0_44 = arith.constant 0 : index
    %c0_45 = arith.constant 0 : index
    %44 = vector.load %arg1[%c0_43, %c0_44, %c0_45] : memref<1x16x8xbf16, #tpu.memory_space<vmem>>, vector<1x16x8xbf16>
    %45 = vector.shape_cast %44 : vector<1x16x8xbf16> to vector<16x8xbf16>
    %c0_46 = arith.constant 0 : index
    %c0_47 = arith.constant 0 : index
    %46 = vector.load %arg2[%c0_46, %c0_47] : memref<8x16xbf16, #tpu.memory_space<vmem>>, vector<8x16xbf16>
    %cst_48 = arith.constant dense<0.000000e+00> : vector<16x16xf32>
    %47 = tpu.matmul %45, %46, %cst_48 {dimension_numbers = #tpu.dot_dimension_numbers<[1], [0], [0], [1], [0, 0, 1, 1], [], []>} : vector<16x8xbf16>, vector<8x16xbf16>, vector<16x16xf32> -> vector<16x16xf32>
    %c0_49 = arith.constant 0 : index
    %c0_50 = arith.constant 0 : index
    %48 = vector.load %arg11[%c0_49, %c0_50] : memref<1x16xf32, #tpu.memory_space<vmem>>, vector<1x16xf32>
    %49 = vector.broadcast %48 : vector<1x16xf32> to vector<16x16xf32>
    %50 = arith.addf %47, %49 : vector<16x16xf32>
    %cst_51 = arith.constant 0.000000e+00 : f32
    %51 = vector.broadcast %cst_51 : f32 to vector<16x16xf32>
    %52 = arith.maximumf %50, %51 : vector<16x16xf32>
    %c0_52 = arith.constant 0 : index
    %c0_53 = arith.constant 0 : index
    %53 = vector.load %arg5[%c0_52, %c0_53] : memref<1x16xf32, #tpu.memory_space<vmem>>, vector<1x16xf32>
    %54 = vector.broadcast %53 : vector<1x16xf32> to vector<16x16xf32>
    %55 = arith.mulf %52, %54 : vector<16x16xf32>
    %c0_54 = arith.constant 0 : index
    %c0_55 = arith.constant 0 : index
    %56 = vector.load %arg6[%c0_54, %c0_55] : memref<1x16xf32, #tpu.memory_space<vmem>>, vector<1x16xf32>
    %57 = vector.broadcast %56 : vector<1x16xf32> to vector<16x16xf32>
    %58 = arith.addf %55, %57 : vector<16x16xf32>
    %59 = math.tanh %58 : vector<16x16xf32>
    %60 = arith.truncf %59 : vector<16x16xf32> to vector<16x16xbf16>
    %c0_56 = arith.constant 0 : index
    %c0_57 = arith.constant 0 : index
    %61 = vector.load %arg7[%c0_56, %c0_57] : memref<16x8xbf16, #tpu.memory_space<vmem>>, vector<16x8xbf16>
    %cst_58 = arith.constant dense<0.000000e+00> : vector<16x8xf32>
    %62 = tpu.matmul %60, %61, %cst_58 {dimension_numbers = #tpu.dot_dimension_numbers<[1], [0], [0], [1], [0, 0, 1, 1], [], []>} : vector<16x16xbf16>, vector<16x8xbf16>, vector<16x8xf32> -> vector<16x8xf32>
    %c0_59 = arith.constant 0 : index
    %c0_60 = arith.constant 0 : index
    %63 = vector.load %arg12[%c0_59, %c0_60] : memref<1x8xf32, #tpu.memory_space<vmem>>, vector<1x8xf32>
    %cst_61 = arith.constant dense<0xFF800000> : vector<8xf32>
    %64 = vector.multi_reduction <maximumf>, %62, %cst_61 [0] : vector<16x8xf32> to vector<8xf32>
    %65 = vector.shape_cast %64 : vector<8xf32> to vector<1x8xf32>
    %66 = arith.maximumf %63, %65 : vector<1x8xf32>
    %c0_62 = arith.constant 0 : index
    %c0_63 = arith.constant 0 : index
    %67 = vector.load %arg12[%c0_62, %c0_63] : memref<1x8xf32, #tpu.memory_space<vmem>>, vector<1x8xf32>
    %68 = arith.subf %67, %66 : vector<1x8xf32>
    %69 = math.exp %68 : vector<1x8xf32>
    %70 = vector.broadcast %66 : vector<1x8xf32> to vector<16x8xf32>
    %71 = arith.subf %62, %70 : vector<16x8xf32>
    %72 = math.exp %71 : vector<16x8xf32>
    %73 = arith.extf %45 : vector<16x8xbf16> to vector<16x8xf32>
    %74 = arith.mulf %72, %73 : vector<16x8xf32>
    %c0_64 = arith.constant 0 : index
    %c0_65 = arith.constant 0 : index
    %75 = vector.load %arg13[%c0_64, %c0_65] : memref<1x8xf32, #tpu.memory_space<vmem>>, vector<1x8xf32>
    %76 = arith.mulf %69, %75 : vector<1x8xf32>
    %cst_66 = arith.constant dense<0.000000e+00> : vector<8xf32>
    %77 = vector.multi_reduction <add>, %72, %cst_66 [0] : vector<16x8xf32> to vector<8xf32>
    %78 = vector.shape_cast %77 : vector<8xf32> to vector<1x8xf32>
    %79 = arith.addf %76, %78 : vector<1x8xf32>
    %c0_67 = arith.constant 0 : index
    %c0_68 = arith.constant 0 : index
    %80 = vector.load %arg13[%c0_67, %c0_68] : memref<1x8xf32, #tpu.memory_space<vmem>>, vector<1x8xf32>
    tpu.vector_store %arg13[%c0_67, %c0_68], %79 {strides = array<i32>} : memref<1x8xf32, #tpu.memory_space<vmem>>, vector<1x8xf32>,
    %c0_69 = arith.constant 0 : index
    %c0_70 = arith.constant 0 : index
    %81 = vector.load %arg14[%c0_69, %c0_70] : memref<1x8xf32, #tpu.memory_space<vmem>>, vector<1x8xf32>
    %82 = arith.mulf %69, %81 : vector<1x8xf32>
    %cst_71 = arith.constant dense<0.000000e+00> : vector<8xf32>
    %83 = vector.multi_reduction <add>, %74, %cst_71 [0] : vector<16x8xf32> to vector<8xf32>
    %84 = vector.shape_cast %83 : vector<8xf32> to vector<1x8xf32>
    %85 = arith.addf %82, %84 : vector<1x8xf32>
    %c0_72 = arith.constant 0 : index
    %c0_73 = arith.constant 0 : index
    %86 = vector.load %arg14[%c0_72, %c0_73] : memref<1x8xf32, #tpu.memory_space<vmem>>, vector<1x8xf32>
    tpu.vector_store %arg14[%c0_72, %c0_73], %85 {strides = array<i32>} : memref<1x8xf32, #tpu.memory_space<vmem>>, vector<1x8xf32>,
    %c0_74 = arith.constant 0 : index
    %c0_75 = arith.constant 0 : index
    %87 = vector.load %arg15[%c0_74, %c0_75] : memref<1x8xf32, #tpu.memory_space<vmem>>, vector<1x8xf32>
    %88 = arith.mulf %69, %87 : vector<1x8xf32>
    %89 = arith.extf %45 : vector<16x8xbf16> to vector<16x8xf32>
    %90 = arith.mulf %74, %89 : vector<16x8xf32>
    %cst_76 = arith.constant dense<0.000000e+00> : vector<8xf32>
    %91 = vector.multi_reduction <add>, %90, %cst_76 [0] : vector<16x8xf32> to vector<8xf32>
    %92 = vector.shape_cast %91 : vector<8xf32> to vector<1x8xf32>
    %93 = arith.addf %88, %92 : vector<1x8xf32>
    %c0_77 = arith.constant 0 : index
    %c0_78 = arith.constant 0 : index
    %94 = vector.load %arg15[%c0_77, %c0_78] : memref<1x8xf32, #tpu.memory_space<vmem>>, vector<1x8xf32>
    tpu.vector_store %arg15[%c0_77, %c0_78], %93 {strides = array<i32>} : memref<1x8xf32, #tpu.memory_space<vmem>>, vector<1x8xf32>,
    %c0_79 = arith.constant 0 : index
    %c0_80 = arith.constant 0 : index
    %95 = vector.load %arg12[%c0_79, %c0_80] : memref<1x8xf32, #tpu.memory_space<vmem>>, vector<1x8xf32>
    tpu.vector_store %arg12[%c0_79, %c0_80], %66 {strides = array<i32>} : memref<1x8xf32, #tpu.memory_space<vmem>>, vector<1x8xf32>,
    %c0_81 = arith.constant 0 : index
    %c0_82 = arith.constant 0 : index
    %96 = vector.load %arg13[%c0_81, %c0_82] : memref<1x8xf32, #tpu.memory_space<vmem>>, vector<1x8xf32>
    %cst_83 = arith.constant 1.000000e+00 : f32
    %97 = vector.broadcast %cst_83 : f32 to vector<1x8xf32>
    %98 = arith.divf %97, %96 : vector<1x8xf32>
    %c0_84 = arith.constant 0 : index
    %c0_85 = arith.constant 0 : index
    %99 = vector.load %arg14[%c0_84, %c0_85] : memref<1x8xf32, #tpu.memory_space<vmem>>, vector<1x8xf32>
    %100 = arith.mulf %99, %98 : vector<1x8xf32>
    %c0_86 = arith.constant 0 : index
    %c0_87 = arith.constant 0 : index
    %101 = vector.load %arg15[%c0_86, %c0_87] : memref<1x8xf32, #tpu.memory_space<vmem>>, vector<1x8xf32>
    %102 = arith.mulf %101, %98 : vector<1x8xf32>
    %103 = arith.mulf %100, %100 : vector<1x8xf32>
    %104 = arith.subf %102, %103 : vector<1x8xf32>
    %cst_88 = arith.constant 9.99999996E-13 : f32
    %105 = vector.broadcast %cst_88 : f32 to vector<1x8xf32>
    %106 = arith.maximumf %104, %105 : vector<1x8xf32>
    %107 = math.sqrt %106 : vector<1x8xf32>
    %108 = tpu.concatenate %100, %107 in 1 : vector<1x8xf32>, vector<1x8xf32> -> vector<1x16xf32>
    %c0_89 = arith.constant 0 : index
    %c0_90 = arith.constant 0 : index
    %c0_91 = arith.constant 0 : index
    %109 = vector.load %arg8[%c0_89, %c0_90, %c0_91] : memref<1x1x16xf32, #tpu.memory_space<vmem>>, vector<1x1x16xf32>
    %110 = vector.shape_cast %109 : vector<1x1x16xf32> to vector<1x16xf32>
    %111 = vector.shape_cast %108 : vector<1x16xf32> to vector<1x1x16xf32>
    tpu.vector_store %arg8[%c0_89, %c0_90, %c0_91], %111 {strides = array<i32>} : memref<1x1x16xf32, #tpu.memory_space<vmem>>, vector<1x1x16xf32>,
    return
  }
  func.func @transform_0(%arg0: i32) -> (i32, i32, i32) {
    %c0_i32 = arith.constant 0 : i32
    %c0_i32_0 = arith.constant 0 : i32
    %c0_i32_1 = arith.constant 0 : i32
    return %arg0, %c0_i32, %c0_i32_0 : i32, i32, i32
  }
  func.func @transform_1(%arg0: i32) -> (i32, i32) {
    %c0_i32 = arith.constant 0 : i32
    %c0_i32_0 = arith.constant 0 : i32
    %c0_i32_1 = arith.constant 0 : i32
    return %c0_i32, %c0_i32_0 : i32, i32
  }
  func.func @transform_2(%arg0: i32) -> (i32, i32) {
    %c0_i32 = arith.constant 0 : i32
    %c0_i32_0 = arith.constant 0 : i32
    %c0_i32_1 = arith.constant 0 : i32
    return %c0_i32, %c0_i32_0 : i32, i32
  }
  func.func @transform_3(%arg0: i32) -> (i32, i32) {
    %c0_i32 = arith.constant 0 : i32
    %c0_i32_0 = arith.constant 0 : i32
    %c0_i32_1 = arith.constant 0 : i32
    return %c0_i32, %c0_i32_0 : i32, i32
  }
  func.func @transform_4(%arg0: i32) -> (i32, i32) {
    %c0_i32 = arith.constant 0 : i32
    %c0_i32_0 = arith.constant 0 : i32
    %c0_i32_1 = arith.constant 0 : i32
    return %c0_i32, %c0_i32_0 : i32, i32
  }
  func.func @transform_5(%arg0: i32) -> (i32, i32) {
    %c0_i32 = arith.constant 0 : i32
    %c0_i32_0 = arith.constant 0 : i32
    %c0_i32_1 = arith.constant 0 : i32
    return %c0_i32, %c0_i32_0 : i32, i32
  }
  func.func @transform_6(%arg0: i32) -> (i32, i32) {
    %c0_i32 = arith.constant 0 : i32
    %c0_i32_0 = arith.constant 0 : i32
    %c0_i32_1 = arith.constant 0 : i32
    return %c0_i32, %c0_i32_0 : i32, i32
  }
  func.func @transform_7(%arg0: i32) -> (i32, i32, i32) {
    %c0_i32 = arith.constant 0 : i32
    %c0_i32_0 = arith.constant 0 : i32
    %c0_i32_1 = arith.constant 0 : i32
    return %arg0, %c0_i32, %c0_i32_0 : i32, i32, i32
  }
}

</mosaic_0001>

<bundles_post_ra>
// kernel: tpu_custom_call.1
= control target key start
LH: loop header
LB: loop body
LE: loop exit
PB: predicated region body
PF: predicated region fallthrough
CT: control target
= control target key end

     0   :  { %12 = vsyncpa [#allocation10], 0  ;;  %s1088_s0 = inlined_call_operand.vmem [shape: bf16[2,16,8], index: 0, kind: input, shape index: {}]   ;;  %s1089_s1 = inlined_call_operand.vmem [shape: bf16[8,16], index: 1, kind: input, shape index: {}]   ;;  %s1090_s2 = inlined_call_operand.vmem [shape: bf16[16,16], index: 2, kind: input, shape index: {}]   ;;  %s1091_s3 = inlined_call_operand.vmem [shape: f32[1,16], index: 3, kind: input, shape index: {}]   ;;  %s1092_s4 = inlined_call_operand.vmem [shape: f32[1,16], index: 4, kind: input, shape index: {}]   ;;  %s1093_s5 = inlined_call_operand.vmem [shape: f32[1,16], index: 5, kind: input, shape index: {}]   ;;  %s1094_s6 = inlined_call_operand.vmem [shape: bf16[16,8], index: 6, kind: input, shape index: {}]   ;;  %s1095_s7 = inlined_call_operand.hbm [shape: f32[2,1,16], index: 7, kind: output, shape index: {}]  }
   0x1   :  { %14 = vsyncpa [#allocation10 + $0x1], 0  ;;  %s916_s24 = smov 0   ;;  %s918_s25 = smov 0  }
   0x2   :  { %s920_s26 = smov 0   ;;  %s922_s27 = smov 0  }
   0x3 LB: > { %s937_s28 = sadd.s32 4294967295, %s869_s27   ;;  %s699_s29 = sadd.s32 4294967294, %s869_s27   ;;  %s869_s27 = sphi %s922_s27, %s1101_s27   ;;  %s865_s26 = sphi %s920_s26, %s1100_s26   ;;  %s861_s25 = sphi %s918_s25, %s1099_s25   ;;  %s857_s24 = sphi %s916_s24, %s1098_s24  }
   0x4   : > { %s941_s30 = sadd.s32 1, %s869_s27   ;;  %s179_s8 = sadd.s32 1, %s865_s26 }
   0x5   : > { %s176_s9 = ssub.s32 %s869_s27, %s941_s30  ;;  %p189_p0 = scmp.ne.s32.totalorder %s865_s26, %s861_s25 }
   0x6   : > { %p177_p1 = scmp.eq.s32.totalorder %s176_s9, 0  ;;  %p190_p2 = scmp.eq.s32.totalorder %s937_s28, 1 }
   0x7   : > { %p195_p3 = scmp.ne.s32.totalorder %s861_s25, %s857_s24  ;;  %p196_p4 = scmp.eq.s32.totalorder %s699_s29, 1 }
   0x8   : > { %s952_s10 = scalar_select %p177_p1, %s865_s26, %s179_s8  }
   0x9   : > { %p954_p5 = por %p190_p2, %p189_p0  ;;  %p958_p6 = por %p196_p4, %p195_p3 }
   0xa   : > { %p702_p7 = scmp.ge.s32.totalorder %s869_s27, 1  ;;  %p240_p8 = scmp.lt.s32.totalorder %s869_s27, 3 }
   0xc   : > { %p241_p9 = pnand %p702_p7, %p240_p8 }
   0xd   : > { %p271_p10 = scmp.lt.s32.totalorder (!%p241_p9), %s937_s28, 1  ;;  %s873_s22 = smov (!%p241_p9), 8  }
   0xe   : > { %244 = sbr.rel (%p241_p9) target bundleno = 856 (0x358), region = 48  ;;  %s714_s18 = sshll.u32 (!%p241_p9), %s937_s28, 4 }
   0xf   : > { %s1051_s29 = scalar_lea.hbm (!%p241_p9), %s1095_s7, %s714_s18 }
  0x13   : > { %vm277_vm0 = vcmask 57344   ;;  %v871_v0 = vmov 0.0   ;;  %s272_s13 = scalar_select %p271_p10, %s937_s28, 1  ;;  %vm285_vm1 = vcmask 64512   ;;  %v789_v35 = vld [vmem:[%s1090_s2] sm:$0xff]   ;;  %vm412_vm2 = vcmask 1043456  }
  0x14   : > { %278 = vst.msk [vmem:[#allocation2] sm:$0x1] %vm277_vm0, %v871_v0  ;;  %279 = vst.msk [vmem:[#allocation3] sm:$0x1] %vm277_vm0, %v871_v0  ;;  %728 = vmatprep.subr.bf16.mxu0 %v871_v0  ;;  %734 = vmatprep.subr.bf16.mxu1 %v871_v0  ;;  %v396_v36 = vld [vmem:[%s1089_s1] sm:$0xf]  ;;  %v326_v37 = vlaneseq }
  0x15   : > { %391 = vst.msk [vmem:[#allocation6] sm:$0x1] %vm277_vm0, %v871_v0  ;;  %392 = vst.msk [vmem:[#allocation7] sm:$0x1] %vm277_vm0, %v871_v0  ;;  %s717_s14 = sshll.u32 %s272_s13, 3  ;;  %v414_v38 = vsel %vm412_vm2, %v396_v36, 0  ;;  %729 = vmatpush3.bf16.msra.mxu0 %v789_v35 }
  0x16   : > { %393 = vst.msk [vmem:[#allocation8] sm:$0x1] %vm277_vm0, %v871_v0  ;;  %s981_s17 = scalar_lea.vmem %s1088_s0, %s717_s14  ;;  %735 = vmatpush3.bf16.msra.mxu1 %v414_v38  ;;  %740 = vmatprep.subr.bf16.mxu0 %v871_v0  ;;  %vm872_vm3 = vmmov 0   ;;  %v327_v40 = vshrl.u32 %v326_v37, 7  ;;  %vm344_vm6 = vcmask 130048   ;;  %v791_v55 = vld [vmem:[%s1094_s6] sm:$0xff]  }
  0x17   : > { %v719_v1 = vld [vmem:[%s981_s17] sm:$0xff]   ;;  %730 = vmatprep.mubr.msk.bf16.mxu0 %vm872_vm3, %v871_v0  ;;  %736 = vmatprep.mubr.msk.bf16.mxu1 %vm872_vm3, %v871_v0  ;;  %vm388_vm7 = vcmask 122880   ;;  %s875_s28 = smov [#allocation9]  }
  0x18   : > { %v720_v2 = vunpack.c.l.bf16 %v719_v1  ;;  %v721_v3 = vunpack.c.h.bf16 %v719_v1  ;;  %v997_v39 = vld [vmem:[%s981_s17] sm:$0xff]   ;;  %v1006_v44 = vsub.s32 0, %v327_v40  ;;  %s269_s17 = sand.u32 1, %s861_s25  }
  0x19   : > { %737 = vmatmul.mubr.msk.bf16.vlgmr.msra.gmra.mxu1 %vm285_vm1, %v997_v39  ;;  %v337_v56 = vld [vmem:[%s1091_s3] sm:$0x1]  ;;  %v558_v35 = vunpack.c.l.bf16 %v997_v39  ;;  %v559_v36 = vunpack.c.h.bf16 %v997_v39  ;;  %s270_s19 = scalar_lea.vmem [#allocation9], %s269_s17  ;;  %s632_s8 = scalar_lea.sflag [#allocation10], %s269_s17 }
  0x1a   : > { %v286_v4 = vsel %vm285_vm1, %v720_v2, 0.0  ;;  %v287_v5 = vsel %vm285_vm1, %v721_v3, 0.0  ;;  %v298_v6 = vmul.f32 %v720_v2, %v720_v2  ;;  %v299_v7 = vmul.f32 %v721_v3, %v721_v3  ;;  %v710_v1 = vld [vmem:[%s1092_s4] ss:$0 sm:$0xff]  ;;  %s644_s20 = sshll.u32 %s270_s19, 4  ;;  %s645_s20 = int_to_ptr.vmem [resolvable:$true] %s644_s20 }
  0x1b   : > { %v288_v8 = vadd.f32 %v287_v5, %v286_v4  ;;  %v284_v21 = vld [vmem:[#allocation2] sm:$0x1]  ;;  %v297_v24 = vld [vmem:[#allocation3] sm:$0x1]  ;;  %s809_s9 = scalar_lea.vmem %s645_s20, 16 }
  0x1c   : > { %v300_v9 = vsel %vm285_vm1, %v298_v6, 0.0  ;;  %v301_v10 = vsel %vm285_vm1, %v299_v7, 0.0  ;;  %v711_v4 = vld [vmem:[%s1093_s5] ss:$0 sm:$0xff]  ;;  %p810_p11 = scmp.ne.s32.totalorder %s645_s20, %s809_s9 }
  0x1d   : > { %v289_v11 = vrot.slane %v288_v8, 4  ;;  %v302_v12 = vadd.f32 %v301_v10, %v300_v9 }
  0x1e   : > { %p811_p12 = pnand %p810_p11, %p954_p5 }
  0x1f   : > { %v290_v13 = vadd.f32 %v289_v11, %v288_v8  ;;  %v303_v14 = vrot.slane %v302_v12, 4 }
  0x20   : > { %p812_p13 = pneg %p811_p12 }
  0x21   : > { %v291_v15 = vrot.slane %v290_v13, 2  ;;  %v304_v16 = vadd.f32 %v303_v14, %v302_v12  ;;  %v874_v12 = vmov -inf  }
  0x22   : > { %390 = vst.msk [vmem:[#allocation5] sm:$0x1] %vm277_vm0, %v874_v12 }
  0x23   : > { %v292_v17 = vadd.f32 %v291_v15, %v290_v13  ;;  %v305_v18 = vrot.slane %v304_v16, 2 }
  0x25   : > { %v293_v19 = vrot.slane %v292_v17, 1  ;;  %v306_v20 = vadd.f32 %v305_v18, %v304_v16 }
  0x27   : > { %v294_v22 = vadd.f32 %v293_v19, %v292_v17  ;;  %v307_v23 = vrot.slane %v306_v20, 1 }
  0x29   : > { %v295_v25 = vadd.f32 %v294_v22, %v284_v21  ;;  %v308_v26 = vadd.f32 %v307_v23, %v306_v20 }
  0x2b   : > { %296 = vst.msk [vmem:[#allocation2] sm:$0x1] %vm277_vm0, %v295_v25  ;;  %v309_v27 = vadd.f32 %v308_v26, %v297_v24  ;;  %v532_v25 = vld [vmem:[#allocation5] sm:$0x1] }
  0x2d   : > { %310 = vst.msk [vmem:[#allocation3] sm:$0x1] %vm277_vm0, %v309_v27 }
  0x32   : > { %v311_v28 = vld [vmem:[#allocation2] sm:$0x1] }
  0x33   : > { %v312_v29 = vmul.f32 0.0625, %v311_v28 }
  0x34   : > { %v313_v30 = vld [vmem:[#allocation3] sm:$0x1] }
  0x35   : > { %v314_v31 = vmul.f32 0.0625, %v313_v30  ;;  %v315_v32 = vmul.f32 %v312_v29, %v312_v29 }
  0x37   : > { %v316_v33 = vsub.f32 %v314_v31, %v315_v32 }
  0x39   : > { %v317_v34 = vmax.f32 %v316_v33, 1e-12 }
  0x3b   : > { %793 = vrsqrt.f32 %v317_v34  ;;  %vm320_vm4 = vcmp.eq.f32.partialorder %v317_v34, inf  ;;  %v323_v42 = vand.u32 2147483648, %v317_v34  ;;  %vm322_vm5 = vcmp.eq.f32.partialorder %v317_v34, 0.0 }
  0x48   : > { %v794_v41 = vpop.eup %793 }
  0x49   : > { %v319_v43 = vmul.f32 %v794_v41, %v317_v34 }
  0x4b   : > { %v321_v45 = vsel %vm320_vm4, %v317_v34, %v319_v43 }
  0x4c   : > { %v324_v46 = vsel %vm322_vm5, %v323_v42, %v321_v45 }
  0x4d   : > { %v329_v47 = vrot.slane %v324_v46, %v1006_v44 }
  0x4f   : > { %330 = vrot.lane.b32.xlu0 %v329_v47, %s873_s22 }
  0xc1   : > { %v331_v48 = vpop.permute.xlu0 %330 }
  0xc2   : > { %v333_v49 = vsel %vm285_vm1, %v312_v29, %v331_v48 }
  0xc3   : > { %v334_v50 = vpack.c.bf16 %v333_v49, %v333_v49 }
  0xc5   : > { %731 = vmatmul.mubr.msk.bf16.vlgmr.msra.gmra.mxu0 %vm344_vm6, %v334_v50 }
  0xc6   : > { %742 = vmatprep.mubr.msk.bf16.mxu0 %vm872_vm3, %v871_v0  ;;  %741 = vmatpush3.bf16.msra.mxu0 %v791_v55 }
  0xd9   : > { %v450_v51 = vpop.f32.mrf.mxu1 }
  0xdb   : > { %v738_v52 = vpop.f32.mrf.mxu1 }
  0xdd   : > { %v453_v53 = vpop.f32.mrf.mxu1 }
  0xdf   : > { %v739_v54 = vpop.f32.mrf.mxu1 }
 0x185   : > { %v382_v57 = vpop.f32.mrf.mxu0 }
 0x186   : > { %v383_v58 = vadd.f32 %v382_v57, %v337_v56 }
 0x187   : > { %v732_v59 = vpop.f32.mrf.mxu0 }
 0x188   : > { %389 = vst.msk [vmem:[#allocation4] sm:$0x1] %vm388_vm7, %v383_v58 }
 0x189   : > { %v385_v60 = vpop.f32.mrf.mxu0 }
 0x18b   : > { %v733_v61 = vpop.f32.mrf.mxu0 }
 0x18f   : > { %v707_v62 = vld [vmem:[#allocation4] ss:$0 sm:$0xff] }
 0x190   : > { %v451_v63 = vadd.f32 %v707_v62, %v450_v51  ;;  %v454_v0 = vadd.f32 %v707_v62, %v453_v53 }
 0x192   : > { %v457_v2 = vmax.f32 %v451_v63, 0.0  ;;  %v458_v3 = vmax.f32 %v454_v0, 0.0  ;;  %v562_v63 = vld [vmem:[#allocation6] sm:$0x1] }
 0x194   : > { %v466_v5 = vmul.f32 %v710_v1, %v457_v2  ;;  %v467_v6 = vmul.f32 %v710_v1, %v458_v3  ;;  %v575_v3 = vld [vmem:[#allocation7] sm:$0x1] }
 0x196   : > { %v475_v7 = vadd.f32 %v711_v4, %v466_v5  ;;  %v476_v8 = vadd.f32 %v711_v4, %v467_v6 }
 0x198   : > { %795 = vtanh.f32 %v475_v7 }
 0x199   : > { %797 = vtanh.f32 %v476_v8  ;;  %v588_v8 = vld [vmem:[#allocation8] sm:$0x1] }
 0x1a5   : > { %v796_v9 = vpop.eup %795 }
 0x1a6   : > { %v798_v10 = vpop.eup %797 }
 0x1a7   : > { %v479_v11 = vpack.c.bf16 %v798_v10, %v796_v9 }
 0x1a9   : > { %743 = vmatmul.mubr.msk.bf16.vlgmr.msra.gmra.mxu0 %vm344_vm6, %v479_v11 }
 0x269   : > { %v525_v13 = vpop.f32.mrf.mxu0 }
 0x26a   : > { %v533_v16 = vsel %vm285_vm1, %v525_v13, -inf }
 0x26b   : > { %v744_v14 = vpop.f32.mrf.mxu0 }
 0x26d   : > { %v528_v15 = vpop.f32.mrf.mxu0 }
 0x26e   : > { %v534_v17 = vsel %vm285_vm1, %v528_v15, -inf }
 0x26f   : > { %v535_v18 = vmax.f32 %v533_v16, %v534_v17  ;;  %v745_v19 = vpop.f32.mrf.mxu0 }
 0x271   : > { %v536_v20 = vrot.slane %v535_v18, 4 }
 0x273   : > { %v537_v21 = vmax.f32 %v535_v18, %v536_v20 }
 0x275   : > { %v538_v22 = vrot.slane %v537_v21, 2 }
 0x277   : > { %v539_v23 = vmax.f32 %v537_v21, %v538_v22 }
 0x279   : > { %v540_v24 = vrot.slane %v539_v23, 1 }
 0x27b   : > { %v541_v26 = vmax.f32 %v539_v23, %v540_v24 }
 0x27d   : > { %v542_v27 = vmax.f32 %v532_v25, %v541_v26 }
 0x27f   : > { %v550_v28 = vrot.slane %v542_v27, %v1006_v44  ;;  %603 = vst.msk [vmem:[#allocation5] sm:$0x1] %vm277_vm0, %v542_v27  ;;  %v543_v33 = vsub.f32 %v532_v25, %v542_v27 }
 0x281   : > { %v552_v29 = vsub.f32 %v525_v13, %v550_v28  ;;  %v553_v30 = vsub.f32 %v528_v15, %v550_v28  ;;  %v544_v34 = vmul.f32 1.442695, %v543_v33 }
 0x283   : > { %v554_v31 = vmul.f32 1.442695, %v552_v29  ;;  %v556_v32 = vmul.f32 1.442695, %v553_v30 }
 0x285   : > { %799 = vpow2.f32 %v554_v31 }
 0x286   : > { %801 = vpow2.f32 %v556_v32 }
 0x287   : > { %803 = vpow2.f32 %v544_v34 }
 0x292   : > { %v800_v37 = vpop.eup %799 }
 0x293   : > { %v802_v38 = vpop.eup %801  ;;  %v560_v40 = vmul.f32 %v800_v37, %v558_v35  ;;  %v564_v41 = vsel %vm285_vm1, %v800_v37, 0.0 }
 0x294   : > { %v561_v42 = vmul.f32 %v802_v38, %v559_v36  ;;  %v565_v43 = vsel %vm285_vm1, %v802_v38, 0.0  ;;  %v804_v62 = vpop.eup %803 }
 0x295   : > { %v566_v45 = vadd.f32 %v565_v43, %v564_v41  ;;  %v577_v46 = vsel %vm285_vm1, %v560_v40, 0.0  ;;  %v590_v47 = vmul.f32 %v560_v40, %v558_v35  ;;  %v563_v4 = vmul.f32 %v804_v62, %v562_v63 }
 0x296   : > { %v578_v48 = vsel %vm285_vm1, %v561_v42, 0.0  ;;  %v591_v49 = vmul.f32 %v561_v42, %v559_v36  ;;  %v576_v10 = vmul.f32 %v804_v62, %v575_v3  ;;  %v589_v14 = vmul.f32 %v804_v62, %v588_v8 }
 0x297   : > { %v567_v50 = vrot.slane %v566_v45, 4  ;;  %v579_v51 = vadd.f32 %v578_v48, %v577_v46  ;;  %v592_v39 = vsel %vm285_vm1, %v590_v47, 0.0 }
 0x298   : > { %v593_v52 = vsel %vm285_vm1, %v591_v49, 0.0 }
 0x299   : > { %v568_v53 = vadd.f32 %v567_v50, %v566_v45  ;;  %v580_v54 = vrot.slane %v579_v51, 4  ;;  %v594_v55 = vadd.f32 %v593_v52, %v592_v39 }
 0x29b   : > { %v569_v56 = vrot.slane %v568_v53, 2  ;;  %v581_v57 = vadd.f32 %v580_v54, %v579_v51  ;;  %v595_v58 = vrot.slane %v594_v55, 4 }
 0x29d   : > { %v570_v59 = vadd.f32 %v569_v56, %v568_v53  ;;  %v582_v60 = vrot.slane %v581_v57, 2  ;;  %v596_v61 = vadd.f32 %v595_v58, %v594_v55 }
 0x29f   : > { %v571_v0 = vrot.slane %v570_v59, 1  ;;  %v583_v1 = vadd.f32 %v582_v60, %v581_v57  ;;  %v597_v2 = vrot.slane %v596_v61, 2 }
 0x2a1   : > { %v572_v5 = vadd.f32 %v571_v0, %v570_v59  ;;  %v584_v6 = vrot.slane %v583_v1, 1  ;;  %v598_v7 = vadd.f32 %v597_v2, %v596_v61 }
 0x2a3   : > { %v573_v9 = vadd.f32 %v572_v5, %v563_v4  ;;  %v585_v11 = vadd.f32 %v584_v6, %v583_v1  ;;  %v599_v12 = vrot.slane %v598_v7, 1 }
 0x2a5   : > { %574 = vst.msk [vmem:[#allocation6] sm:$0x1] %vm277_vm0, %v573_v9  ;;  %v586_v13 = vadd.f32 %v585_v11, %v576_v10  ;;  %v600_v15 = vadd.f32 %v599_v12, %v598_v7 }
 0x2a7   : > { %587 = vst.msk [vmem:[#allocation7] sm:$0x1] %vm277_vm0, %v586_v13  ;;  %v601_v16 = vadd.f32 %v600_v15, %v589_v14 }
 0x2a9   : > { %602 = vst.msk [vmem:[#allocation8] sm:$0x1] %vm277_vm0, %v601_v16 }
 0x2ac   : > { %v604_v17 = vld [vmem:[#allocation6] sm:$0x1] }
 0x2ad   : > { %805 = vrcp.f32 %v604_v17 }
 0x2ae   : > { %v607_v19 = vld [vmem:[#allocation7] sm:$0x1] }
 0x2b0   : > { %v609_v21 = vld [vmem:[#allocation8] sm:$0x1] }
 0x2ba   : > { %v806_v18 = vpop.eup %805 }
 0x2bb   : > { %v608_v20 = vmul.f32 %v806_v18, %v607_v19  ;;  %v610_v22 = vmul.f32 %v806_v18, %v609_v21 }
 0x2bd   : > { %v611_v23 = vmul.f32 %v608_v20, %v608_v20 }
 0x2bf   : > { %v612_v24 = vsub.f32 %v610_v22, %v611_v23 }
 0x2c1   : > { %v613_v25 = vmax.f32 %v612_v24, 1e-12 }
 0x2c3   : > { %807 = vrsqrt.f32 %v613_v25  ;;  %vm616_vm8 = vcmp.eq.f32.partialorder %v613_v25, inf  ;;  %v619_v28 = vand.u32 2147483648, %v613_v25  ;;  %vm618_vm9 = vcmp.eq.f32.partialorder %v613_v25, 0.0 }
 0x2d0   : > { %v808_v26 = vpop.eup %807 }
 0x2d1   : > { %v615_v27 = vmul.f32 %v808_v26, %v613_v25 }
 0x2d3   : > { %v617_v29 = vsel %vm616_vm8, %v613_v25, %v615_v27 }
 0x2d4   : > { %v620_v30 = vsel %vm618_vm9, %v619_v28, %v617_v29 }
 0x2d5   : > { %v625_v31 = vrot.slane %v620_v30, %v1006_v44 }
 0x2d7   : > { %626 = vrot.lane.b32.xlu0 %v625_v31, %s873_s22  ;;  %s813_s22 = sshll.u32 %s875_s28, 4  ;;  %s814_s22 = int_to_ptr.vmem [resolvable:$false] %s813_s22 }
 0x2d8   : > { %s815_s13 = scalar_lea.vmem %s814_s22, 32  ;;  %p816_p0 = scmp.lt.s32.totalorder %s645_s20, %s814_s22 }
 0x2d9   : > { %p817_p1 = scmp.lt.s32.totalorder %s815_s13, %s809_s9 }
 0x2db   : > { %p818_p2 = por %p817_p1, %p816_p0 }
 0x2dd   : > { %p819_p3 = pnand %p818_p2, %p812_p13 }
 0x349   : > { %v627_v32 = vpop.permute.xlu0 %626 }
 0x34a   : > { %v629_v33 = vsel %vm285_vm1, %v608_v20, %v627_v32 }
 0x34b   : > { %630 = vst.msk [vmem:[%s270_s19] sm:$0x1] %vm388_vm7, %v629_v33 }
 0x34c   : > { %822 = shalt.err (!%p819_p3)
}
 0x34d   : > { %s823_s14 = scalar_lea.hbm %s1051_s29, 16  ;;  %s827_s17 = scalar_lea.hbm %s1095_s7, 32 }
 0x34e   : > { %p824_p4 = scmp.ne.s32.totalorder %s1051_s29, %s823_s14  ;;  %p828_p9 = scmp.lt.s32.totalorder %s1051_s29, %s1095_s7 }
 0x34f   : > { %p829_p10 = scmp.lt.s32.totalorder %s827_s17, %s823_s14 }
 0x350   : > { %p825_p7 = pnand %p824_p4, %p954_p5 }
 0x351   : > { %p830_p11 = por %p829_p10, %p828_p9 }
 0x352   : > { %p826_p8 = pneg %p825_p7 }
 0x354   : > { %p831_p12 = pnand %p830_p11, %p826_p8 }
 0x356   : > { %834 = shalt.err (!%p831_p12)
}
 0x357   : > { %746 = dma.vmem_to_hbm [thread:$0]  (%p954_p5), %s645_s20, 16, %s1051_s29, %s632_s8  }
 0x358 PF: > { %p752_p13 = scmp.ge.s32.totalorder %s869_s27, 2  ;;  %s656_s21 = sand.u32 1, %s857_s24  }
 0x359   : > { %s657_s23 = scalar_lea.sflag [#allocation10], %s656_s21 }
 0x35a   : > { %p749_p0 = pnand %p752_p13, %p958_p6 }
 0x35c   : > { %p750_p1 = pneg %p749_p0 }
 0x35e   : > { %852 = dma.done.wait (%p750_p1), %s657_s23, 16  }
 0x35f   : > { %854 = vsyncadd (%p750_p1), %s657_s23, 4294967280  ;;  %p17_p2 = scmp.ge.s32.totalorder %s941_s30, 4   ;;  %s1098_s24 = smov %s861_s25 }
 0x360   : > { %s1099_s25 = smov %s865_s26  ;;  %s1100_s26 = smov %s952_s10 }
 0x361   : > { %s1101_s27 = smov %s941_s30  ;;  %19 = sbr.rel (!%p17_p2) target bundleno = 3 (0x3), region = 83 }
 0x366   :  { %661 = vsyncpa [#allocation10], 1 }
 0x367   :  { %663 = vsyncpa [#allocation10 + $0x1], 1 }

</bundles_post_ra>
